<compile_context>
chip_gen: v7x
topology: tpu7x:2x2x1
jax: 0.10.0
libtpu: 0.0.40
codegen_flags: <defaults>
</compile_context>

<pallas_src>
import functools
import math

import jax
import jax.numpy as jnp
from jax import lax
from jax.experimental import pallas as pl
from jax.experimental.pallas import tpu as pltpu


_LANE = 128
_TB_CAP = 1024           # max batch rows per grid step
_MULTI_STEP_MIN_B = 16   # keep >=2 grid steps (v7x megacore) once B is this big


def _round_up(x, m):
    return ((x + m - 1) // m) * m


def _vmem_budget_bytes():
    """Per-chip budget for everything resident in VMEM during the kernel."""
    phys = None
    try:
        info = pltpu.get_tpu_info()
        phys = getattr(info, "vmem_capacity_bytes", None)
    except Exception:
        phys = None
    if not phys or phys <= 0:
        phys = 64 * 1024 * 1024          # conservative: v7x per-TensorCore VMEM
    # 3/4 of physical with a 96 MiB cap (v5e/v6e: 128 MiB phys, v7x: 64 MiB).
    return int(min(phys * 3 // 4, 96 * 1024 * 1024))


# --------------------------------------------------------------------------- #
# Kernels
# --------------------------------------------------------------------------- #

def _head_kernel(feat_ref, w_ref, out_ref, *, hw, cosine, temperature):
    """feat_ref: [TB, C, HW] (encoder dtype); w_ref: [C, N_pad] f32
    (pre-transposed, rows pre-L2-normalized for 'cos'); out_ref: [1, TB, N_pad] f32."""
    # F.adaptive_avg_pool2d(x, 1).squeeze(-1).squeeze(-1): mean over the
    # spatial (lane) axis, accumulated in f32 without a full-tile astype copy.
    pooled = jnp.sum(feat_ref[...], axis=-1, dtype=jnp.float32) * (1.0 / hw)   # [TB, C]
    if cosine:
        # F.normalize(x, p=2, dim=-1, eps=1e-12) == x * rsqrt(max(sum(x^2), eps^2))
        sumsq = jnp.sum(pooled * pooled, axis=-1, keepdims=True)
        pooled = pooled * lax.rsqrt(jnp.maximum(sumsq, 1e-24))
    logits = jnp.dot(pooled, w_ref[...], preferred_element_type=jnp.float32)
    out_ref[0] = temperature * logits


def _encode_kernel(feat_ref, out_ref, *, hw, c, c_pad):
    """encode(): pooled embedding. feat_ref: [TB, C, HW] -> out_ref: [1, TB, C_pad]."""
    pooled = jnp.sum(feat_ref[...], axis=-1, dtype=jnp.float32) * (1.0 / hw)   # [TB, C]
    if c_pad != c:
        # Lane-dense store: pad channels to a multiple of 128 (zeros sliced off
        # in the wrapper).
        pooled = jnp.concatenate(
            [pooled, jnp.zeros((pooled.shape[0], c_pad - c), jnp.float32)], axis=-1)
    out_ref[0] = pooled


# --------------------------------------------------------------------------- #
# Module wrapper
# --------------------------------------------------------------------------- #

class MYNETPallas:
    """JAX/Pallas port of MYNET's forward pass (encoder feature maps -> logits)."""

    def __init__(self, *, num_features=64, num_classes=100, temperature=16.0,
                 mode='ft_cos', key=None):
        self.mode = mode
        self.temperature = float(temperature)
        self.num_features = num_features
        self.num_classes = num_classes
        self._vmem_budget = _vmem_budget_bytes()

        # nn.Linear(num_features, num_classes, bias=False) default init:
        # kaiming_uniform_(a=sqrt(5)) == U(-1/sqrt(fan_in), 1/sqrt(fan_in))
        if key is None:
            key = jax.random.PRNGKey(0)
        bound = 1.0 / math.sqrt(num_features)
        self.fc_weight = jax.random.uniform(
            key, (num_classes, num_features), jnp.float32, -bound, bound)

        # Constant weight preprocessing (hoisted out of the kernel):
        #  * pad classes to a lane-dense multiple of 128 with zero rows,
        #  * transpose to [C, N_pad],
        #  * pre-normalize rows for the 'cos' head.
        n_pad = _round_up(num_classes, _LANE)
        self.num_classes_padded = n_pad
        w_pad = jnp.zeros((n_pad, num_features), jnp.float32).at[:num_classes].set(
            self.fc_weight)
        self._w_dot_t = jnp.transpose(w_pad)                          # [C, N_pad]
        w_norm = self.fc_weight / jnp.maximum(
            jnp.linalg.norm(self.fc_weight, axis=-1, keepdims=True), 1e-12)
        w_cos_pad = jnp.zeros((n_pad, num_features), jnp.float32).at[:num_classes].set(
            w_norm)
        self._w_cos_t = jnp.transpose(w_cos_pad)                      # [C, N_pad]

    # -- layout / tiling --------------------------------------------------------

    def _features(self, feat_nchw):
        B, C, H, W = feat_nchw.shape
        assert C == self.num_features
        # Free reshape of contiguous NCHW -> [B, C, H*W]; no transpose, no copy.
        return feat_nchw.reshape(B, C, H * W), H * W

    def _plan(self, B, HW, itemsize):
        """Pick (tb, b_pad) so the resident VMEM fits the per-chip budget."""
        C = self.num_features
        n_out = max(self.num_classes_padded, _round_up(C, _LANE))
        # Resident VMEM: 2x feature tile (double-buffered) + 1x f32 working
        # copy + 2x output rows; fixed: 2x pinned weight.
        fixed = 2 * C * self.num_classes_padded * 4
        per_row = 2 * C * HW * itemsize + C * HW * 4 + 2 * n_out * 4
        cap = max(1, (self._vmem_budget - fixed) // per_row)
        cap = int(min(cap, B, _TB_CAP))
        if B >= _MULTI_STEP_MIN_B:
            cap = min(cap, max(1, B // 2))   # >=2 grid steps for v7x's 2 TCs
        # Prefer a divisor of B (avoids a wrapper-side jnp.pad HBM round trip).
        tb = 1
        for cand in range(cap, 0, -1):
            if B % cand == 0:
                tb = cand
                break
        if tb * 4 < cap:                     # pathological B (e.g. large prime)
            tb = cap
        b_pad = _round_up(B, tb)
        return tb, b_pad

    def _prep(self, feat_nchw):
        feat, HW = self._features(feat_nchw)
        B = feat.shape[0]
        tb, b_pad = self._plan(B, HW, feat.dtype.itemsize)
        if b_pad != B:
            feat = jnp.pad(feat, ((0, b_pad - B), (0, 0), (0, 0)))
        return feat, HW, B, tb, b_pad

    # -- forward paths ----------------------------------------------------------

    def encode(self, feat_nchw):
        feat, HW, B, tb, b_pad = self._prep(feat_nchw)
        C = self.num_features
        c_pad = _round_up(C, _LANE)
        steps = b_pad // tb
        kernel = functools.partial(_encode_kernel, hw=HW, c=C, c_pad=c_pad)
        out = pl.pallas_call(
            kernel,
            out_shape=jax.ShapeDtypeStruct((steps, tb, c_pad), jnp.float32),
            grid=(steps,),
            in_specs=[pl.BlockSpec((tb, C, HW), lambda b: (b, 0, 0))],
            out_specs=pl.BlockSpec((1, tb, c_pad), lambda b: (b, 0, 0)),
            compiler_params=pltpu.CompilerParams(
                dimension_semantics=("parallel",),
                vmem_limit_bytes=self._vmem_budget),
        )(feat)
        return out.reshape(b_pad, c_pad)[:B, :C]

    def __call__(self, feat_nchw):
        if self.mode == 'encoder':
            return self.encode(feat_nchw)
        if 'cos' in self.mode:
            w_t = self._w_cos_t
        elif 'dot' in self.mode:
            w_t = self._w_dot_t
        else:
            raise ValueError('Unknown mode')

        feat, HW, B, tb, b_pad = self._prep(feat_nchw)
        C = self.num_features
        n_pad = self.num_classes_padded
        steps = b_pad // tb
        kernel = functools.partial(
            _head_kernel, hw=HW, cosine='cos' in self.mode,
            temperature=self.temperature)
        out = pl.pallas_call(
            kernel,
            out_shape=jax.ShapeDtypeStruct((steps, tb, n_pad), jnp.float32),
            grid=(steps,),
            in_specs=[pl.BlockSpec((tb, C, HW), lambda b: (b, 0, 0)),
                      pl.BlockSpec((C, n_pad), lambda b: (0, 0))],   # pinned weight
            out_specs=pl.BlockSpec((1, tb, n_pad), lambda b: (b, 0, 0)),
            compiler_params=pltpu.CompilerParams(
                dimension_semantics=("parallel",),
                vmem_limit_bytes=self._vmem_budget),
        )(feat, w_t)
        return out.reshape(b_pad, n_pad)[:B, :self.num_classes]


# --------------------------------------------------------------------------- #
# Pure-JAX reference (reproduces the PyTorch semantics) and smoke test
# --------------------------------------------------------------------------- #

def _reference_forward(feat_nchw, fc_weight, mode, temperature):
    pooled = jnp.mean(feat_nchw.astype(jnp.float32), axis=(2, 3))
    if mode == 'encoder':
        return pooled
    if 'cos' in mode:
        xn = pooled / jnp.maximum(
            jnp.linalg.norm(pooled, axis=-1, keepdims=True), 1e-12)
        wn = fc_weight / jnp.maximum(
            jnp.linalg.norm(fc_weight, axis=-1, keepdims=True), 1e-12)
        return temperature * (xn @ wn.T)
    return temperature * (pooled @ fc_weight.T)


if __name__ == "__main__":
    key = jax.random.PRNGKey(0)
    k_feat, k_fc = jax.random.split(key)

    # cifar100 branch: resnet20 encoder -> num_features = 64 feature maps, 8x8.
    B, C, H, W = 2, 64, 8, 8
    num_classes = 100
    feat = jax.random.normal(k_feat, (B, C, H, W), jnp.float32)

    net = MYNETPallas(num_features=C, num_classes=num_classes,
                      temperature=16.0, mode='ft_cos', key=k_fc)

    # 'cos' metric head
    logits = jax.block_until_ready(net(feat))
    ref = _reference_forward(feat, net.fc_weight, net.mode, net.temperature)
    assert logits.shape == (B, num_classes)
    assert jnp.allclose(logits, ref, atol=1e-3, rtol=1e-4)

    # 'encoder' mode (pooled embeddings)
    net.mode = 'encoder'
    emb = jax.block_until_ready(net(feat))
    ref_emb = _reference_forward(feat, net.fc_weight, 'encoder', net.temperature)
    assert emb.shape == (B, C)
    assert jnp.allclose(emb, ref_emb, atol=1e-5, rtol=1e-5)

    # 'dot' metric head
    net.mode = 'ft_dot'
    logits_dot = jax.block_until_ready(net(feat))
    ref_dot = _reference_forward(feat, net.fc_weight, 'ft_dot', net.temperature)
    assert jnp.allclose(logits_dot, ref_dot, atol=1e-3, rtol=1e-4)

    print("KERNEL_OK")
</pallas_src>

<mosaic_0001>
module attributes {stable_mosaic.version = 11 : i64} {
  func.func @_head_kernel(%arg0: i32, %arg1: memref<2x64x64xf32, #tpu.memory_space<vmem>>, %arg2: memref<64x128xf32, #tpu.memory_space<vmem>>, %arg3: memref<1x2x128xf32, #tpu.memory_space<vmem>>) attributes {dimension_semantics = [#tpu.dimension_semantics<parallel>], iteration_bounds = array<i64: 1>, scalar_prefetch = 0 : i64, scratch_operands = 0 : i64, tpu.core_type = #tpu.core_type<tc>, window_params = [{transform_indices = @transform_0, window_bounds = array<i64: 2, 64, 64>}, {pipeline_mode = #tpu.pipeline_mode<synchronous>, transform_indices = @transform_1, window_bounds = array<i64: 64, 128>}, {transform_indices = @transform_2, window_bounds = array<i64: 1, 2, 128>}]} {
    %c0 = arith.constant 0 : index
    %c0_0 = arith.constant 0 : index
    %c0_1 = arith.constant 0 : index
    %0 = vector.load %arg1[%c0, %c0_0, %c0_1] : memref<2x64x64xf32, #tpu.memory_space<vmem>>, vector<2x64x64xf32>
    %cst = arith.constant dense<0.000000e+00> : vector<2x64xf32>
    %1 = vector.multi_reduction <add>, %0, %cst [2] : vector<2x64x64xf32> to vector<2x64xf32>
    %cst_2 = arith.constant 1.562500e-02 : f32
    %2 = vector.broadcast %cst_2 : f32 to vector<2x64xf32>
    %3 = arith.mulf %1, %2 : vector<2x64xf32>
    %4 = arith.mulf %3, %3 : vector<2x64xf32>
    %cst_3 = arith.constant dense<0.000000e+00> : vector<2xf32>
    %5 = vector.multi_reduction <add>, %4, %cst_3 [1] : vector<2x64xf32> to vector<2xf32>
    %6 = vector.shape_cast %5 : vector<2xf32> to vector<2x1xf32>
    %cst_4 = arith.constant 1.000000e-24 : f32
    %7 = vector.broadcast %cst_4 : f32 to vector<2x1xf32>
    %8 = arith.maximumf %6, %7 : vector<2x1xf32>
    %9 = math.rsqrt %8 : vector<2x1xf32>
    %10 = vector.broadcast %9 : vector<2x1xf32> to vector<2x64xf32>
    %11 = arith.mulf %3, %10 : vector<2x64xf32>
    %c0_5 = arith.constant 0 : index
    %c0_6 = arith.constant 0 : index
    %12 = vector.load %arg2[%c0_5, %c0_6] : memref<64x128xf32, #tpu.memory_space<vmem>>, vector<64x128xf32>
    %cst_7 = arith.constant dense<0.000000e+00> : vector<2x128xf32>
    %13 = tpu.matmul %11, %12, %cst_7 {dimension_numbers = #tpu.dot_dimension_numbers<[1], [0], [0], [1], [0, 0, 1, 1], [], []>} : vector<2x64xf32>, vector<64x128xf32>, vector<2x128xf32> -> vector<2x128xf32>
    %cst_8 = arith.constant 1.600000e+01 : f32
    %14 = vector.broadcast %cst_8 : f32 to vector<2x128xf32>
    %15 = arith.mulf %14, %13 : vector<2x128xf32>
    %c0_9 = arith.constant 0 : index
    %c0_10 = arith.constant 0 : index
    %c0_11 = arith.constant 0 : index
    %16 = vector.load %arg3[%c0_9, %c0_10, %c0_11] : memref<1x2x128xf32, #tpu.memory_space<vmem>>, vector<1x2x128xf32>
    %17 = vector.shape_cast %16 : vector<1x2x128xf32> to vector<2x128xf32>
    %18 = vector.shape_cast %15 : vector<2x128xf32> to vector<1x2x128xf32>
    tpu.vector_store %arg3[%c0_9, %c0_10, %c0_11], %18 {strides = array<i32>} : memref<1x2x128xf32, #tpu.memory_space<vmem>>, vector<1x2x128xf32>,
    return
  }
  func.func @transform_0(%arg0: i32) -> (i32, i32, i32) {
    %c0_i32 = arith.constant 0 : i32
    %c0_i32_0 = arith.constant 0 : i32
    %c0_i32_1 = arith.constant 0 : i32
    return %arg0, %c0_i32, %c0_i32_0 : i32, i32, i32
  }
  func.func @transform_1(%arg0: i32) -> (i32, i32) {
    %c0_i32 = arith.constant 0 : i32
    %c0_i32_0 = arith.constant 0 : i32
    %c0_i32_1 = arith.constant 0 : i32
    return %c0_i32, %c0_i32_0 : i32, i32
  }
  func.func @transform_2(%arg0: i32) -> (i32, i32, i32) {
    %c0_i32 = arith.constant 0 : i32
    %c0_i32_0 = arith.constant 0 : i32
    %c0_i32_1 = arith.constant 0 : i32
    return %arg0, %c0_i32, %c0_i32_0 : i32, i32, i32
  }
}

</mosaic_0001>

<bundles_post_ra>
// kernel: tpu_custom_call.1
= control target key start
LH: loop header
LB: loop body
LE: loop exit
PB: predicated region body
PF: predicated region fallthrough
CT: control target
= control target key end

     0   :  { %7 = vsyncpa [#allocation3], 0  ;;  %s887_s0 = inlined_call_operand.hbm [shape: f32[2,64,64], index: 0, kind: input, shape index: {}]   ;;  %s888_s1 = inlined_call_operand.hbm [shape: f32[64,128], index: 1, kind: input, shape index: {}]   ;;  %s889_s2 = inlined_call_operand.hbm [shape: f32[1,2,128], index: 2, kind: output, shape index: {}]  }
   0x1   :  { %8 = vsyncpa [#allocation6], 0 }
   0x2   :  { %9 = vsyncpa [#allocation4], 0  ;;  %s650_s9 = smov [#allocation2]   ;;  %s578_s13 = scalar_lea.hbm %s887_s0, 2048 }
   0x3   :  { %s15_s10 = sshll.u32 %s650_s9, 4  ;;  %p579_p0 = scmp.ne.s32.totalorder %s887_s0, %s578_s13  ;;  %s16_s10 = int_to_ptr.vmem [resolvable:$true] %s15_s10 }
   0x4   :  { %p582_p1 = scmp.lt.u32.totalorder %s578_s13, %s887_s0 }
   0x6   :  { %p584_p2 = pnand %p582_p1, %p579_p0 }
   0x8   :  { %587 = shalt.err (!%p584_p2)
}
   0x9   :  { %s588_s18 = scalar_lea.vmem %s16_s10, 2048  ;;  %p593_p4 = scmp.lt.s32.totalorder %s16_s10, %s16_s10 }
   0xa   :  { %p589_p3 = scmp.ne.s32.totalorder %s16_s10, %s588_s18  ;;  %p594_p5 = scmp.lt.s32.totalorder %s588_s18, %s588_s18 }
   0xc   :  { %p595_p6 = por %p594_p5, %p593_p4 }
   0xe   :  { %p596_p7 = pnand %p595_p6, %p589_p3 }
  0x10   :  { %599 = shalt.err (!%p596_p7)
}
  0x11   :  { %s651_s19 = smov 128   ;;  %s652_s20 = smov 8  }
  0x12   :  { %21 = dma.hbm_to_vmem [thread:$0]  %s887_s0, 2048, %s16_s10, [#allocation3], %s651_s19, %s651_s19, %s652_s20  }
  0x13   :  { %s653_s23 = smov [#allocation5]   ;;  %s600_s27 = scalar_lea.hbm %s888_s1, 1024 }
  0x14   :  { %s27_s24 = sshll.u32 %s653_s23, 4  ;;  %p601_p8 = scmp.ne.s32.totalorder %s888_s1, %s600_s27  ;;  %s28_s24 = int_to_ptr.vmem [resolvable:$true] %s27_s24 }
  0x15   :  { %p604_p9 = scmp.lt.u32.totalorder %s600_s27, %s888_s1 }
  0x17   :  { %p606_p10 = pnand %p604_p9, %p601_p8 }
  0x19   :  { %609 = shalt.err (!%p606_p10)
}
  0x1a   :  { %s610_s4 = scalar_lea.vmem %s28_s24, 1024  ;;  %p615_p12 = scmp.lt.s32.totalorder %s28_s24, %s28_s24 }
  0x1b   :  { %p611_p11 = scmp.ne.s32.totalorder %s28_s24, %s610_s4  ;;  %p616_p13 = scmp.lt.s32.totalorder %s610_s4, %s610_s4 }
  0x1d   :  { %p617_p0 = por %p616_p13, %p615_p12 }
  0x1f   :  { %p618_p1 = pnand %p617_p0, %p611_p11 }
  0x21   :  { %621 = shalt.err (!%p618_p1)
}
  0x22   :  { %33 = dma.hbm_to_vmem [thread:$0]  %s888_s1, 1024, %s28_s24, [#allocation6], %s651_s19, %s651_s19, %s652_s20  }
  0x23   :  { %644 = dma.done.wait [#allocation3], 2048  }
  0x24   :  { %645 = vsyncadd [#allocation3], 4294965248 }
  0x25   :  { %646 = dma.done.wait [#allocation6], 1024  }
  0x26   :  { %647 = vsyncadd [#allocation6], 4294966272  ;;  %vm56_vm0 = vcmask 523264   ;;  %v48_v0 = vld [vmem:[#allocation2 + $0x40] sm:$0xff]  ;;  %v49_v2 = vld [vmem:[#allocation2 + $0x48] sm:$0xff]  ;;  %v153_v36 = vlaneseq  ;;  %vm164_vm1 = vcmask 130112  }
  0x27   :  { %v40_v1 = vld [vmem:[#allocation2] sm:$0xff]  ;;  %v81_v3 = vsel %vm56_vm0, %v48_v0, 0.0  ;;  %v41_v5 = vld [vmem:[#allocation2 + $0x8] sm:$0xff]  ;;  %v84_v6 = vsel %vm56_vm0, %v49_v2, 0.0  ;;  %v50_v8 = vld [vmem:[#allocation2 + $0x50] sm:$0xff]  ;;  %vm171_vm2 = vcmask 195712  }
  0x28   :  { %v57_v4 = vsel %vm56_vm0, %v40_v1, 0.0  ;;  %82 = vadd.xlane.f32.xlu1 %v81_v3  ;;  %v60_v7 = vsel %vm56_vm0, %v41_v5, 0.0  ;;  %v42_v9 = vld [vmem:[#allocation2 + $0x10] sm:$0xff]  ;;  %v87_v10 = vsel %vm56_vm0, %v50_v8, 0.0  ;;  %v51_v12 = vld [vmem:[#allocation2 + $0x58] sm:$0xff]  ;;  %v52_v16 = vld [vmem:[#allocation2 + $0x60] sm:$0xff] }
  0x29   :  { %58 = vadd.xlane.f32.xlu0 %v57_v4  ;;  %v63_v11 = vsel %vm56_vm0, %v42_v9, 0.0  ;;  %v43_v13 = vld [vmem:[#allocation2 + $0x18] sm:$0xff]  ;;  %v90_v14 = vsel %vm56_vm0, %v51_v12, 0.0  ;;  %v44_v17 = vld [vmem:[#allocation2 + $0x20] sm:$0xff]  ;;  %v93_v18 = vsel %vm56_vm0, %v52_v16, 0.0  ;;  %v53_v20 = vld [vmem:[#allocation2 + $0x68] sm:$0xff] }
  0x2a   :  { %v66_v15 = vsel %vm56_vm0, %v43_v13, 0.0  ;;  %v69_v19 = vsel %vm56_vm0, %v44_v17, 0.0  ;;  %v45_v21 = vld [vmem:[#allocation2 + $0x28] sm:$0xff]  ;;  %v96_v22 = vsel %vm56_vm0, %v53_v20, 0.0  ;;  %v54_v24 = vld [vmem:[#allocation2 + $0x70] sm:$0xff]  ;;  %v55_v28 = vld [vmem:[#allocation2 + $0x78] sm:$0xff] }
  0x2b   :  { %v72_v23 = vsel %vm56_vm0, %v45_v21, 0.0  ;;  %v46_v25 = vld [vmem:[#allocation2 + $0x30] sm:$0xff]  ;;  %v99_v26 = vsel %vm56_vm0, %v54_v24, 0.0  ;;  %v47_v29 = vld [vmem:[#allocation2 + $0x38] sm:$0xff]  ;;  %v102_v30 = vsel %vm56_vm0, %v55_v28, 0.0  ;;  %v154_v39 = vand.u32 127, %v153_v36 }
  0x2c   :  { %85 = vadd.xlane.f32.xlu1 %v84_v6  ;;  %v75_v27 = vsel %vm56_vm0, %v46_v25, 0.0  ;;  %v78_v31 = vsel %vm56_vm0, %v47_v29, 0.0  ;;  %v714_v40 = vshrl.u32 %v153_v36, 7  ;;  %vm178_vm3 = vcmask 261312   ;;  %s658_s1 = smov [#allocation7]  }
  0x2d   :  { %61 = vadd.xlane.f32.xlu0 %v60_v7  ;;  %v159_v41 = vadd.s32 4294967288, %v154_v39  ;;  %v166_v44 = vadd.s32 4294967280, %v154_v39  ;;  %v173_v45 = vadd.s32 4294967272, %v154_v39  ;;  %v180_v46 = vadd.s32 4294967264, %v154_v39  ;;  %s514_s6 = sshll.u32 %s658_s1, 4  ;;  %s515_s6 = int_to_ptr.vmem [resolvable:$true] %s514_s6 }
  0x2e   :  { %v717_v47 = vsub.s32 %v154_v39, %v714_v40  ;;  %v187_v55 = vadd.s32 4294967256, %v154_v39  ;;  %v194_v56 = vadd.s32 4294967248, %v154_v39  ;;  %v201_v0 = vadd.s32 4294967240, %v154_v39  ;;  %s622_s7 = scalar_lea.vmem %s515_s6, 32  ;;  %p627_p3 = scmp.lt.s32.totalorder %s515_s6, %s515_s6 }
  0x2f   :  { %v720_v48 = vsub.s32 %v159_v41, %v714_v40  ;;  %v727_v53 = vsub.s32 %v166_v44, %v714_v40  ;;  %v730_v54 = vsub.s32 %v173_v45, %v714_v40  ;;  %v745_v63 = vsub.s32 %v180_v46, %v714_v40  ;;  %p623_p2 = scmp.ne.s32.totalorder %s515_s6, %s622_s7  ;;  %p628_p4 = scmp.lt.s32.totalorder %s622_s7, %s622_s7 }
  0x30   :  { %88 = vadd.xlane.f32.xlu1 %v87_v10  ;;  %vm185_vm4 = vcmask 326912   ;;  %v756_v7 = vsub.s32 %v187_v55, %v714_v40  ;;  %v763_v10 = vsub.s32 %v194_v56, %v714_v40  ;;  %vm192_vm5 = vcmask 392512  }
  0x31   :  { %64 = vadd.xlane.f32.xlu0 %v63_v11  ;;  %v778_v17 = vsub.s32 %v201_v0, %v714_v40  ;;  %vm199_vm6 = vcmask 458112   ;;  %vm206_vm7 = vcmask 523712   ;;  %vm247_vm8 = vcmask 1041409   ;;  %p629_p5 = por %p628_p4, %p627_p3 }
  0x32   :  { %vm250_vm9 = vcmask 517120   ;;  %vm656_vm10 = vmmov 0  }
  0x33   :  { %p630_p6 = pnand %p629_p5, %p623_p2 }
  0x34   :  { %91 = vadd.xlane.f32.xlu1 %v90_v14 }
  0x35   :  { %67 = vadd.xlane.f32.xlu0 %v66_v15 }
  0x38   :  { %94 = vadd.xlane.f32.xlu1 %v93_v18 }
  0x39   :  { %70 = vadd.xlane.f32.xlu0 %v69_v19 }
  0x3c   :  { %97 = vadd.xlane.f32.xlu1 %v96_v22 }
  0x3d   :  { %73 = vadd.xlane.f32.xlu0 %v72_v23 }
  0x40   :  { %100 = vadd.xlane.f32.xlu1 %v99_v26 }
  0x41   :  { %76 = vadd.xlane.f32.xlu0 %v75_v27 }
  0x44   :  { %103 = vadd.xlane.f32.xlu1 %v102_v30 }
  0x45   :  { %79 = vadd.xlane.f32.xlu0 %v78_v31 }
  0xb5   :  { %v83_v32 = vpop.xlane.xlu1 %82 }
  0xb6   :  { %v59_v33 = vpop.xlane.xlu0 %58  ;;  %v732_v57 = vmul.f32 0.015625, %v83_v32 }
  0xb7   :  { %v734_v58 = vmul.f32 0.015625, %v59_v33 }
  0xb8   :  { %v129_v11 = vmul.f32 %v732_v57, %v732_v57 }
  0xb9   :  { %v86_v34 = vpop.xlane.xlu1 %85  ;;  %v121_v12 = vmul.f32 %v734_v58, %v734_v58 }
  0xba   :  { %v62_v35 = vpop.xlane.xlu0 %61  ;;  %v722_v49 = vmul.f32 0.015625, %v86_v34  ;;  %v211_v28 = vrot.slane %v129_v11, %v717_v47 }
  0xbb   :  { %v724_v50 = vmul.f32 0.015625, %v62_v35  ;;  %v158_v29 = vrot.slane %v121_v12, %v717_v47 }
  0xbc   :  { %v130_v1 = vmul.f32 %v722_v49, %v722_v49 }
  0xbd   :  { %v89_v37 = vpop.xlane.xlu1 %88  ;;  %v122_v2 = vmul.f32 %v724_v50, %v724_v50 }
  0xbe   :  { %v65_v38 = vpop.xlane.xlu0 %64  ;;  %v736_v59 = vmul.f32 0.015625, %v89_v37  ;;  %v215_v18 = vrot.slane %v130_v1, %v720_v48 }
  0xbf   :  { %v738_v60 = vmul.f32 0.015625, %v65_v38  ;;  %v163_v19 = vrot.slane %v122_v2, %v720_v48 }
  0xc0   :  { %v131_v13 = vmul.f32 %v736_v59, %v736_v59  ;;  %v216_v36 = vsel %vm164_vm1, %v215_v18, %v211_v28  ;;  %v259_v28 = vsub.s32 0, %v714_v40 }
  0xc1   :  { %v92_v42 = vpop.xlane.xlu1 %91  ;;  %v123_v14 = vmul.f32 %v738_v60, %v738_v60  ;;  %v165_v37 = vsel %vm164_vm1, %v163_v19, %v158_v29  ;;  %v263_v29 = vsub.s32 1, %v714_v40 }
  0xc2   :  { %v68_v43 = vpop.xlane.xlu0 %67  ;;  %v740_v61 = vmul.f32 0.015625, %v92_v42  ;;  %v220_v30 = vrot.slane %v131_v13, %v727_v53 }
  0xc3   :  { %v742_v62 = vmul.f32 0.015625, %v68_v43  ;;  %v170_v31 = vrot.slane %v123_v14, %v727_v53 }
  0xc4   :  { %v132_v15 = vmul.f32 %v740_v61, %v740_v61 }
  0xc5   :  { %v95_v51 = vpop.xlane.xlu1 %94  ;;  %v124_v16 = vmul.f32 %v742_v62, %v742_v62 }
  0xc6   :  { %v71_v52 = vpop.xlane.xlu0 %70  ;;  %v751_v3 = vmul.f32 0.015625, %v95_v51  ;;  %v225_v32 = vrot.slane %v132_v15, %v730_v54  ;;  %v221_v51 = vsel %vm171_vm2, %v220_v30, %v216_v36 }
  0xc7   :  { %v753_v4 = vmul.f32 0.015625, %v71_v52  ;;  %v177_v33 = vrot.slane %v124_v16, %v730_v54  ;;  %v172_v52 = vsel %vm171_vm2, %v170_v31, %v165_v37 }
  0xc8   :  { %v133_v20 = vmul.f32 %v751_v3, %v751_v3  ;;  %v226_v0 = vsel %vm178_vm3, %v225_v32, %v221_v51  ;;  %v289_v51 = vld [vmem:[#allocation5 + $0x30] sm:$0xff] }
  0xc9   :  { %v98_v5 = vpop.xlane.xlu1 %97  ;;  %v125_v21 = vmul.f32 %v753_v4, %v753_v4  ;;  %v179_v1 = vsel %vm178_vm3, %v177_v33, %v172_v52  ;;  %v290_v52 = vld [vmem:[#allocation5 + $0x38] sm:$0xff] }
  0xca   :  { %v74_v6 = vpop.xlane.xlu0 %73  ;;  %v758_v8 = vmul.f32 0.015625, %v98_v5  ;;  %v230_v38 = vrot.slane %v133_v20, %v745_v63 }
  0xcb   :  { %v760_v9 = vmul.f32 0.015625, %v74_v6  ;;  %v184_v39 = vrot.slane %v125_v21, %v745_v63 }
  0xcc   :  { %v134_v24 = vmul.f32 %v758_v8, %v758_v8  ;;  %v231_v6 = vsel %vm185_vm4, %v230_v38, %v226_v0 }
  0xcd   :  { %v101_v22 = vpop.xlane.xlu1 %100  ;;  %v126_v25 = vmul.f32 %v760_v9, %v760_v9  ;;  %v186_v11 = vsel %vm185_vm4, %v184_v39, %v179_v1 }
  0xce   :  { %v77_v23 = vpop.xlane.xlu0 %76  ;;  %v790_v26 = vmul.f32 0.015625, %v101_v22  ;;  %v235_v43 = vrot.slane %v134_v24, %v756_v7 }
  0xcf   :  { %v111_v27 = vmul.f32 0.015625, %v77_v23  ;;  %v191_v44 = vrot.slane %v126_v25, %v756_v7  ;;  %v654_v23 = vmov 0  }
  0xd0   :  { %v135_v34 = vmul.f32 %v790_v26, %v790_v26  ;;  %v236_v15 = vsel %vm192_vm5, %v235_v43, %v231_v6  ;;  %575 = vset.pattern.permute.xlu0 %v654_v23  ;;  %574 = vset.pattern.permute.xlu1 %v654_v23  ;;  %v286_v43 = vld [vmem:[#allocation5 + $0x18] sm:$0xff] }
  0xd1   :  { %v127_v35 = vmul.f32 %v111_v27, %v111_v27  ;;  %v104_v41 = vpop.xlane.xlu1 %103  ;;  %v193_v14 = vsel %vm192_vm5, %v191_v44, %v186_v11 }
  0xd2   :  { %v80_v42 = vpop.xlane.xlu0 %79  ;;  %v806_v45 = vmul.f32 0.015625, %v104_v41  ;;  %v240_v55 = vrot.slane %v135_v34, %v763_v10  ;;  %v284_v41 = vld [vmem:[#allocation5 + $0x8] sm:$0xff] }
  0xd3   :  { %v112_v46 = vmul.f32 0.015625, %v80_v42  ;;  %v198_v56 = vrot.slane %v127_v35, %v763_v10  ;;  %v655_v42 = vmov 0.0|0.0  }
  0xd4   :  { %v136_v2 = vmul.f32 %v806_v45, %v806_v45  ;;  %v241_v18 = vsel %vm199_vm6, %v240_v55, %v236_v15  ;;  %553 = vmatprep.subr.bf16.mxu0 %v655_v42  ;;  %v563_v55 = vpack.c.bf16 %v290_v52, %v289_v51 }
  0xd5   :  { %v128_v5 = vmul.f32 %v112_v46, %v112_v46  ;;  %v200_v16 = vsel %vm199_vm6, %v198_v56, %v193_v14 }
  0xd6   :  { %v245_v12 = vrot.slane %v136_v2, %v778_v17 }
  0xd7   :  { %v205_v13 = vrot.slane %v128_v5, %v778_v17 }
  0xd8   :  { %v246_v20 = vsel %vm206_vm7, %v245_v12, %v241_v18 }
  0xd9   :  { %v207_v19 = vsel %vm206_vm7, %v205_v13, %v200_v16 }
  0xda   :  { %v248_v21 = vsel %vm247_vm8, %v246_v20, %v207_v19 }
  0xdb   :  { %v251_v22 = vsel %vm250_vm9, %v248_v21, 0.0 }
  0xdc   :  { %252 = vadd.xlane.f32.xlu0 %v251_v22 }
 0x169   :  { %v253_v24 = vpop.xlane.xlu0 %252 }
 0x16a   :  { %v254_v25 = vmax.f32 %v253_v24, 1e-24 }
 0x16c   :  { %576 = vrsqrt.f32 %v254_v25 }
 0x176   :  { %v577_v30 = vpop.eup %576 }
 0x177   :  { %v260_v31 = vrot.slane %v577_v30, %v259_v28  ;;  %v264_v32 = vrot.slane %v577_v30, %v263_v29 }
 0x179   :  { %v268_v33 = vmul.f32 %v260_v31, %v724_v50  ;;  %v267_v34 = vmul.f32 %v260_v31, %v734_v58  ;;  %v272_v35 = vmul.f32 %v260_v31, %v760_v9  ;;  %v275_v36 = vmul.f32 %v264_v32, %v732_v57 }
 0x17a   :  { %v273_v37 = vmul.f32 %v260_v31, %v111_v27  ;;  %v276_v38 = vmul.f32 %v264_v32, %v722_v49  ;;  %v274_v40 = vmul.f32 %v260_v31, %v112_v46  ;;  %v269_v39 = vmul.f32 %v260_v31, %v738_v60  ;;  %v283_v60 = vld [vmem:[#allocation5] sm:$0xff] }
 0x17b   :  { %311 = vperm.xlu0 %575, %v268_v33   ;;  %308 = vperm.xlu1 %574, %v267_v34   ;;  %v277_v50 = vmul.f32 %v264_v32, %v736_v59  ;;  %v270_v58 = vmul.f32 %v260_v31, %v742_v62  ;;  %v278_v57 = vmul.f32 %v264_v32, %v740_v61  ;;  %v285_v61 = vld [vmem:[#allocation5 + $0x10] sm:$0xff] }
 0x17c   :  { %v271_v9 = vmul.f32 %v260_v31, %v753_v4  ;;  %v279_v49 = vmul.f32 %v264_v32, %v751_v3  ;;  %v280_v27 = vmul.f32 %v264_v32, %v758_v8  ;;  %v554_v59 = vpack.c.bf16 %v284_v41, %v283_v60  ;;  %v287_v4 = vld [vmem:[#allocation5 + $0x20] sm:$0xff]  ;;  %v288_v8 = vld [vmem:[#allocation5 + $0x28] sm:$0xff] }
 0x17d   :  { %v281_v62 = vmul.f32 %v264_v32, %v790_v26  ;;  %v557_v44 = vpack.c.bf16 %v286_v43, %v285_v61  ;;  %v282_v3 = vmul.f32 %v264_v32, %v806_v45  ;;  %v560_v46 = vpack.c.bf16 %v288_v8, %v287_v4 }
 0x17e   :  { %555 = vmatpush3.bf16.msra.mxu0 %v554_v59  ;;  %v657_v26 = vmov 0.0  }
 0x17f   :  { %323 = vperm.xlu0 %575, %v272_v35   ;;  %332 = vperm.xlu1 %574, %v275_v36  }
 0x180   :  { %556 = vmatprep.subr.bf16.mxu0 %v655_v42  ;;  %550 = vmatprep.mubr.msk.f32.mxu0 %vm656_vm10, %v657_v26 }
 0x182   :  { %558 = vmatpush3.bf16.msra.mxu0 %v557_v44 }
 0x183   :  { %326 = vperm.xlu0 %575, %v273_v37   ;;  %335 = vperm.xlu1 %574, %v276_v38  }
 0x184   :  { %559 = vmatprep.subr.bf16.mxu0 %v655_v42 }
 0x186   :  { %561 = vmatpush3.bf16.msra.mxu0 %v560_v46 }
 0x187   :  { %329 = vperm.xlu0 %575, %v274_v40   ;;  %314 = vperm.xlu1 %574, %v269_v39  }
 0x188   :  { %562 = vmatprep.subr.bf16.mxu0 %v655_v42 }
 0x18a   :  { %564 = vmatpush3.bf16.msra.mxu0 %v563_v55 }
 0x18b   :  { %338 = vperm.xlu1 %574, %v277_v50  }
 0x18f   :  { %317 = vperm.xlu1 %574, %v270_v58  }
 0x193   :  { %341 = vperm.xlu1 %574, %v278_v57  }
 0x197   :  { %320 = vperm.xlu1 %574, %v271_v9  }
 0x19b   :  { %344 = vperm.xlu1 %574, %v279_v49  }
 0x19f   :  { %347 = vperm.xlu1 %574, %v280_v27  }
 0x1a3   :  { %350 = vperm.xlu1 %574, %v281_v62  }
 0x1a7   :  { %353 = vperm.xlu1 %574, %v282_v3  }
 0x1fa   :  { %v309_v56 = vpop.permute.xlu1 %308  ;;  %v312_v6 = vpop.permute.xlu0 %311 }
 0x1fb   :  { %v362_v14 = vrot.slane %v312_v6, %v720_v48  ;;  %v358_v15 = vrot.slane %v309_v56, %v717_v47 }
 0x1fd   :  { %v363_v21 = vsel %vm164_vm1, %v362_v14, %v358_v15 }
 0x1fe   :  { %v333_v0 = vpop.permute.xlu1 %332  ;;  %v324_v13 = vpop.permute.xlu0 %323 }
 0x1ff   :  { %v382_v31 = vrot.slane %v324_v13, %v756_v7  ;;  %v397_v32 = vrot.slane %v333_v0, %v717_v47 }
 0x202   :  { %v336_v1 = vpop.permute.xlu1 %335  ;;  %v327_v22 = vpop.permute.xlu0 %326 }
 0x203   :  { %v401_v25 = vrot.slane %v336_v1, %v720_v48  ;;  %v387_v38 = vrot.slane %v327_v22, %v763_v10 }
 0x205   :  { %v402_v36 = vsel %vm164_vm1, %v401_v25, %v397_v32 }
 0x206   :  { %v315_v2 = vpop.permute.xlu1 %314 }
 0x207   :  { %v367_v16 = vrot.slane %v315_v2, %v727_v53 }
 0x209   :  { %v368_v23 = vsel %vm171_vm2, %v367_v16, %v363_v21 }
 0x20a   :  { %v339_v5 = vpop.permute.xlu1 %338 }
 0x20b   :  { %v406_v29 = vrot.slane %v339_v5, %v727_v53  ;;  %v330_v53 = vpop.permute.xlu0 %329 }
 0x20c   :  { %v392_v58 = vrot.slane %v330_v53, %v778_v17 }
 0x20d   :  { %v407_v40 = vsel %vm171_vm2, %v406_v29, %v402_v36 }
 0x20e   :  { %v318_v45 = vpop.permute.xlu1 %317 }
 0x20f   :  { %v372_v19 = vrot.slane %v318_v45, %v730_v54 }
 0x211   :  { %v373_v28 = vsel %vm178_vm3, %v372_v19, %v368_v23 }
 0x212   :  { %v342_v11 = vpop.permute.xlu1 %341 }
 0x213   :  { %v411_v33 = vrot.slane %v342_v11, %v730_v54 }
 0x215   :  { %v412_v47 = vsel %vm178_vm3, %v411_v33, %v407_v40 }
 0x216   :  { %v321_v12 = vpop.permute.xlu1 %320 }
 0x217   :  { %v377_v20 = vrot.slane %v321_v12, %v745_v63 }
 0x219   :  { %v378_v30 = vsel %vm185_vm4, %v377_v20, %v373_v28 }
 0x21a   :  { %v345_v18 = vpop.permute.xlu1 %344  ;;  %v383_v37 = vsel %vm192_vm5, %v382_v31, %v378_v30 }
 0x21b   :  { %v416_v34 = vrot.slane %v345_v18, %v745_v63  ;;  %v388_v63 = vsel %vm199_vm6, %v387_v38, %v383_v37 }
 0x21c   :  { %v393_v27 = vsel %vm206_vm7, %v392_v58, %v388_v63 }
 0x21d   :  { %v417_v54 = vsel %vm185_vm4, %v416_v34, %v412_v47 }
 0x21e   :  { %v348_v24 = vpop.permute.xlu1 %347 }
 0x21f   :  { %v421_v48 = vrot.slane %v348_v24, %v756_v7 }
 0x221   :  { %v422_v57 = vsel %vm192_vm5, %v421_v48, %v417_v54 }
 0x222   :  { %v351_v35 = vpop.permute.xlu1 %350 }
 0x223   :  { %v426_v39 = vrot.slane %v351_v35, %v763_v10 }
 0x225   :  { %v427_v9 = vsel %vm199_vm6, %v426_v39, %v422_v57 }
 0x226   :  { %v354_v50 = vpop.permute.xlu1 %353 }
 0x227   :  { %v431_v7 = vrot.slane %v354_v50, %v778_v17 }
 0x229   :  { %v432_v49 = vsel %vm206_vm7, %v431_v7, %v427_v9 }
 0x22a   :  { %v433_v10 = vsel %vm247_vm8, %v432_v49, %v393_v27 }
 0x22b   :  { %551 = vmatmul.mubr.msk.f32.vlgmr.msra.gmra.mrb[0].mxu0 %vm56_vm0, %v433_v10 }
 0x2fe   :  { %v502_v60 = vpop.f32.mrb[0].mxu0 }
 0x2ff   :  { %v506_v41 = vmul.f32 16.0, %v502_v60  ;;  %v552_v42 = vpop.f32.mrb[1].mxu0 }
 0x301   :  { %507 = vst [vmem:[#allocation7] sm:$0x3] %v506_v41 }
 0x302   :  { %633 = shalt.err (!%p630_p6)
}
 0x303   :  { %s634_s10 = scalar_lea.hbm %s889_s2, 32 }
 0x304   :  { %p635_p7 = scmp.ne.s32.totalorder %s889_s2, %s634_s10  ;;  %p638_p8 = scmp.lt.u32.totalorder %s634_s10, %s889_s2 }
 0x306   :  { %p640_p9 = pnand %p638_p8, %p635_p7 }
 0x308   :  { %643 = shalt.err (!%p640_p9)
}
 0x309   :  { %517 = dma.vmem_to_hbm [thread:$0]  %s515_s6, 32, %s889_s2, [#allocation4]  }
 0x30a   :  { %648 = dma.done.wait [#allocation4], 32  }
 0x30b   :  { %649 = vsyncadd [#allocation4], 4294967264 }
 0x30c   :  { %521 = vsyncpa [#allocation3], 1 }
 0x30d   :  { %522 = vsyncpa [#allocation6], 1 }
 0x30e   :  { %523 = vsyncpa [#allocation4], 1 }

</bundles_post_ra>
